<compile_context>
chip_gen: v5e
topology: v5e:2x2
jax: 0.10.0
libtpu: 0.0.40
codegen_flags: <defaults>
</compile_context>

<pallas_src>
import math

import jax
import jax.numpy as jnp
from jax.experimental import pallas as pl
from jax.experimental.pallas import tpu as pltpu

# ---------------- config (small, consistent with the module) ----------------
B = 2          # batch
T = 8          # timesteps (query length)
E = 8          # num_entities (key/value length)
H = 32         # hidden_size
NH = 4         # num_attention_heads
DH = H // NH   # attention_head_size
I = 64         # intermediate_size
C = NH * E     # lane-dense probs width
LN_EPS = 1e-12

WSLAB_W = 4 * H + I + H + C     # Wq|Wk|Wv|Wso|Wi|head_mask|seg_sum  -> 256 lanes
VEC_W = max(2 * H, I)           # 64 lanes for the stacked bias slab


def _layernorm(x, g, b, eps=LN_EPS):
    # one-pass form: E[x^2] - mu^2 (both cross-lane reduces independent)
    mu = jnp.mean(x, axis=-1, keepdims=True)
    ms = jnp.mean(x * x, axis=-1, keepdims=True)
    var = ms - mu * mu
    return (x - mu) * jax.lax.rsqrt(var + eps) * g + b


def _gelu(x):
    # exact (erf-based) BERT gelu
    return 0.5 * x * (1.0 + jax.lax.erf(x / math.sqrt(2.0)))


# ------------------------------- Pallas kernel -------------------------------
def span_attention_layer_kernel(h_ref, e_ref, nm_ref, wslab_ref, wo2_ref,
                                vecs_ref, out_ref):
    # whole-block loads; leading-dim reshapes are layout-free
    h2 = h_ref[...].reshape(B * T, H).astype(jnp.float32)      # (16, 32)
    e2 = e_ref[...].reshape(B * E, H).astype(jnp.float32)      # (16, 32)
    nm = nm_ref[...].astype(jnp.float32)                       # (B, 1, C) additive mask

    wslab = wslab_ref[...]                                     # (H, 256) fused weight slab
    wqkv = wslab[:, 0:3 * H]                                   # (32, 96)  Wq|Wk|Wv
    wso = wslab[:, 3 * H:4 * H]                                # (32, 32)
    wi = wslab[:, 4 * H:4 * H + I]                             # (32, 64)
    head_mask = wslab[:, 4 * H + I:4 * H + I + H]              # (C, H) block-diag head selector
    seg_sum = wslab[:, 4 * H + I + H:4 * H + I + H + C]        # (C, C) per-head segment sum

    vecs = vecs_ref[...]                                       # (9, 64) fused bias/LN slab
    bq = vecs[0:1, 0:H]
    bso = vecs[1:2, 0:H]
    ln1g = vecs[2:3, 0:H]
    ln1b = vecs[3:4, 0:H]
    bo2 = vecs[4:5, 0:H]
    ln2g = vecs[5:6, 0:H]
    ln2b = vecs[6:7, 0:H]
    bkv = vecs[7:8, 0:2 * H]
    bi = vecs[8:9, 0:I]

    # --- fused Q / K|V projection: one MXU matmul ----------------------------
    stacked = jnp.concatenate([h2, e2], axis=0)                               # (32, 32)
    proj = jnp.dot(stacked, wqkv, preferred_element_type=jnp.float32)         # (32, 96)
    q2 = proj[:B * T, 0:H] + bq                                               # (16, 32)
    kv2 = proj[B * T:, H:3 * H] + bkv                                         # (16, 64)

    q3 = q2.reshape(B, T, H)
    k3 = kv2[:, :H].reshape(B, E, H)
    v3 = kv2[:, H:].reshape(B, E, H)

    # --- head-batched attention via block-diagonal K/V -----------------------
    # head_mask[c, h] = 1 iff lane c (= head*E + entity) and feature h
    # (= head*DH + d) belong to the same head -> the NH per-head attentions
    # become single lane-dense contractions with probs already in (T, NH*E).
    kb = jnp.concatenate([k3] * NH, axis=1) * head_mask                       # (B, C, H)
    vb = jnp.concatenate([v3] * NH, axis=1) * head_mask                       # (B, C, H)

    scale = 1.0 / math.sqrt(DH)
    s = jnp.einsum("bth,bch->btc", q3, kb,
                   preferred_element_type=jnp.float32) * scale + nm           # (B, T, C)

    # subtracting the per-row global max is shift-invariant within every head
    s = s - jnp.max(s, axis=-1, keepdims=True)
    pu = jnp.exp(s).reshape(B * T, C)

    # per-head denominators via one (C, C) segment-sum matmul (stays lane-dense)
    denom = jnp.dot(pu, seg_sum, preferred_element_type=jnp.float32)          # (B*T, C)
    denom = jnp.maximum(denom, 1e-30)          # guard all-entities-masked rows
    p2 = pu * pl.reciprocal(denom, approx=True)                               # EUP slot
    p3 = p2.reshape(B, T, C)

    ctx2 = jnp.einsum("btc,bch->bth", p3, vb,
                      preferred_element_type=jnp.float32).reshape(B * T, H)   # (B*T, H)

    # --- BertSelfOutput: dense + (dropout=identity) + LayerNorm(residual) ----
    so = jnp.dot(ctx2, wso, preferred_element_type=jnp.float32) + bso
    attn_out = _layernorm(so + h2, ln1g, ln1b)

    # --- BertIntermediate: dense + gelu --------------------------------------
    inter = _gelu(jnp.dot(attn_out, wi, preferred_element_type=jnp.float32) + bi)

    # --- BertOutput: dense + (dropout=identity) + LayerNorm(residual) --------
    o = jnp.dot(inter, wo2_ref[...], preferred_element_type=jnp.float32) + bo2
    out = _layernorm(o + attn_out, ln2g, ln2b)

    # single fused 64-lane store: output in lanes 0:H, probs in lanes H:H+C
    fused = jnp.concatenate([out.reshape(B, T, H), p3], axis=-1)              # (B, T, H+C)
    out_ref[...] = fused.astype(out_ref.dtype)


# --------------------- one-time parameter fusion (off hot path) --------------
def prepare_params(p):
    """Fuse parameters + constant masks into two lane-dense slabs. Run once."""
    c = jnp.arange(C)
    h = jnp.arange(H)
    head_mask = ((c[:, None] // E) == (h[None, :] // DH)).astype(jnp.float32)   # (C, H)
    seg_sum = ((c[:, None] // E) == (c[None, :] // E)).astype(jnp.float32)      # (C, C)

    wslab = jnp.concatenate(
        [p["wq"], p["wk"], p["wv"], p["wso"], p["wi"], head_mask, seg_sum],
        axis=1)                                                                 # (H, 256)

    vecs32 = jnp.concatenate([p["bq"], p["bso"], p["ln1g"], p["ln1b"],
                              p["bo2"], p["ln2g"], p["ln2b"]], axis=0)          # (7, H)
    vecs32 = jnp.pad(vecs32, ((0, 0), (0, VEC_W - H)))
    bkv = jnp.pad(jnp.concatenate([p["bk"], p["bv"]], axis=1),
                  ((0, 0), (0, VEC_W - 2 * H)))
    bi = jnp.pad(p["bi"], ((0, 0), (0, VEC_W - I)))
    vecslab = jnp.concatenate([vecs32, bkv, bi], axis=0)                        # (9, 64)

    return wslab, p["wo2"], vecslab


# --------------------------------- wrapper -----------------------------------
@jax.jit
def span_attention_layer(hidden, entity_emb, entity_mask, wslab, wo2, vecslab):
    """hidden (B,T,H), entity_emb (B,E,H), entity_mask (B,E) in {0,1}."""
    # pre-expand the additive entity mask to lane-dense (B, 1, NH*E)
    neg = (1.0 - entity_mask.astype(jnp.float32)) * -10000.0                   # (B, E)
    neg_mask = jnp.broadcast_to(neg[:, None, None, :], (B, 1, NH, E)).reshape(B, 1, C)

    fused = pl.pallas_call(
        span_attention_layer_kernel,
        grid=(1,),                                           # single step, all chips
        in_specs=[
            pl.BlockSpec((B, T, H), lambda i: (0, 0, 0)),    # hidden
            pl.BlockSpec((B, E, H), lambda i: (0, 0, 0)),    # entity embeddings
            pl.BlockSpec((B, 1, C), lambda i: (0, 0, 0)),    # additive mask (lane-dense)
            pl.BlockSpec((H, WSLAB_W), lambda i: (0, 0)),    # Wq|Wk|Wv|Wso|Wi|masks
            pl.BlockSpec((I, H), lambda i: (0, 0)),          # W output (I, H)
            pl.BlockSpec((9, VEC_W), lambda i: (0, 0)),      # biases / LayerNorm vectors
        ],
        out_specs=pl.BlockSpec((B, T, H + C), lambda i: (0, 0, 0)),
        out_shape=jax.ShapeDtypeStruct((B, T, H + C), jnp.float32),
        compiler_params=pltpu.CompilerParams(dimension_semantics=("arbitrary",)),
    )(hidden, entity_emb, neg_mask, wslab, wo2, vecslab)

    out = fused[:, :, :H]
    # lane-dense (B, T, NH*E) kernel layout -> (B, NH, T, E) module layout
    probs = fused[:, :, H:].reshape(B, T, NH, E).transpose(0, 2, 1, 3)
    return out, probs


# ---------------------------- pure-JAX reference ------------------------------
def reference(hidden, entity_emb, entity_mask, p):
    q = hidden @ p["wq"] + p["bq"]
    k = entity_emb @ p["wk"] + p["bk"]
    v = entity_emb @ p["wv"] + p["bv"]
    qh = q.reshape(B, T, NH, DH).transpose(0, 2, 1, 3)
    kh = k.reshape(B, E, NH, DH).transpose(0, 2, 1, 3)
    vh = v.reshape(B, E, NH, DH).transpose(0, 2, 1, 3)
    s = jnp.einsum("bhtd,bhed->bhte", qh, kh) / math.sqrt(DH)
    s = s + ((1.0 - entity_mask) * -10000.0)[:, None, None, :]
    probs = jax.nn.softmax(s, axis=-1)
    ctx = jnp.einsum("bhte,bhed->bhtd", probs, vh).transpose(0, 2, 1, 3).reshape(B, T, H)

    def ln(x, g, b):
        mu = x.mean(-1, keepdims=True)
        var = ((x - mu) ** 2).mean(-1, keepdims=True)
        return (x - mu) / jnp.sqrt(var + LN_EPS) * g + b

    attn_out = ln(ctx @ p["wso"] + p["bso"] + hidden, p["ln1g"], p["ln1b"])
    inter = _gelu(attn_out @ p["wi"] + p["bi"])
    layer_out = ln(inter @ p["wo2"] + p["bo2"] + attn_out, p["ln2g"], p["ln2b"])
    return layer_out, probs


# ----------------------------------- main -------------------------------------
if __name__ == "__main__":
    key = jax.random.PRNGKey(0)
    keys = jax.random.split(key, 12)

    def w(k, shape):  # deterministic "init_bert_weights": N(0, 0.02)
        return jax.random.normal(k, shape, jnp.float32) * 0.02

    params = {
        "wq": w(keys[0], (H, H)),  "bq": jnp.zeros((1, H), jnp.float32),
        "wk": w(keys[1], (H, H)),  "bk": jnp.zeros((1, H), jnp.float32),
        "wv": w(keys[2], (H, H)),  "bv": jnp.zeros((1, H), jnp.float32),
        "wso": w(keys[3], (H, H)), "bso": jnp.zeros((1, H), jnp.float32),
        "ln1g": jnp.ones((1, H), jnp.float32), "ln1b": jnp.zeros((1, H), jnp.float32),
        "wi": w(keys[4], (H, I)),  "bi": jnp.zeros((1, I), jnp.float32),
        "wo2": w(keys[5], (I, H)), "bo2": jnp.zeros((1, H), jnp.float32),
        "ln2g": jnp.ones((1, H), jnp.float32), "ln2b": jnp.zeros((1, H), jnp.float32),
    }

    hidden = jax.random.normal(keys[6], (B, T, H), jnp.float32)
    entity_emb = jax.random.normal(keys[7], (B, E, H), jnp.float32)
    entity_mask = (jax.random.uniform(keys[8], (B, E)) > 0.3).astype(jnp.float32)
    entity_mask = entity_mask.at[:, 0].set(1.0)  # guarantee at least one valid entity

    # one-time parameter fusion, outside the per-call path
    wslab, wo2, vecslab = prepare_params(params)

    out, probs = span_attention_layer(hidden, entity_emb, entity_mask,
                                      wslab, wo2, vecslab)
    out = jax.block_until_ready(out)
    probs = jax.block_until_ready(probs)

    ref_out, ref_probs = reference(hidden, entity_emb, entity_mask, params)
    assert out.shape == (B, T, H) and probs.shape == (B, NH, T, E)
    # tolerances account for pl.reciprocal(approx=True) in the softmax denominator
    assert jnp.allclose(out, ref_out, atol=2e-3), float(jnp.max(jnp.abs(out - ref_out)))
    assert jnp.allclose(probs, ref_probs, atol=1e-3), float(jnp.max(jnp.abs(probs - ref_probs)))

    print("KERNEL_OK")
</pallas_src>

<mosaic_0001>
module attributes {stable_mosaic.version = 11 : i64} {
  func.func @span_attention_layer_kernel(%arg0: i32, %arg1: memref<2x8x32xf32, #tpu.memory_space<vmem>>, %arg2: memref<2x8x32xf32, #tpu.memory_space<vmem>>, %arg3: memref<2x1x32xf32, #tpu.memory_space<vmem>>, %arg4: memref<32x256xf32, #tpu.memory_space<vmem>>, %arg5: memref<64x32xf32, #tpu.memory_space<vmem>>, %arg6: memref<9x64xf32, #tpu.memory_space<vmem>>, %arg7: memref<2x8x64xf32, #tpu.memory_space<vmem>>) attributes {dimension_semantics = [#tpu.dimension_semantics<arbitrary>], iteration_bounds = array<i64: 1>, scalar_prefetch = 0 : i64, scratch_operands = 0 : i64, tpu.core_type = #tpu.core_type<tc>, window_params = [{pipeline_mode = #tpu.pipeline_mode<synchronous>, transform_indices = @transform_0, window_bounds = array<i64: 2, 8, 32>}, {pipeline_mode = #tpu.pipeline_mode<synchronous>, transform_indices = @transform_1, window_bounds = array<i64: 2, 8, 32>}, {pipeline_mode = #tpu.pipeline_mode<synchronous>, transform_indices = @transform_2, window_bounds = array<i64: 2, 1, 32>}, {pipeline_mode = #tpu.pipeline_mode<synchronous>, transform_indices = @transform_3, window_bounds = array<i64: 32, 256>}, {pipeline_mode = #tpu.pipeline_mode<synchronous>, transform_indices = @transform_4, window_bounds = array<i64: 64, 32>}, {pipeline_mode = #tpu.pipeline_mode<synchronous>, transform_indices = @transform_5, window_bounds = array<i64: 9, 64>}, {pipeline_mode = #tpu.pipeline_mode<synchronous>, transform_indices = @transform_6, window_bounds = array<i64: 2, 8, 64>}]} {
    %c0 = arith.constant 0 : index
    %c0_0 = arith.constant 0 : index
    %c0_1 = arith.constant 0 : index
    %0 = vector.load %arg1[%c0, %c0_0, %c0_1] : memref<2x8x32xf32, #tpu.memory_space<vmem>>, vector<2x8x32xf32>
    %1 = vector.shape_cast %0 : vector<2x8x32xf32> to vector<16x32xf32>
    %c0_2 = arith.constant 0 : index
    %c0_3 = arith.constant 0 : index
    %c0_4 = arith.constant 0 : index
    %2 = vector.load %arg2[%c0_2, %c0_3, %c0_4] : memref<2x8x32xf32, #tpu.memory_space<vmem>>, vector<2x8x32xf32>
    %3 = vector.shape_cast %2 : vector<2x8x32xf32> to vector<16x32xf32>
    %c0_5 = arith.constant 0 : index
    %c0_6 = arith.constant 0 : index
    %c0_7 = arith.constant 0 : index
    %4 = vector.load %arg3[%c0_5, %c0_6, %c0_7] : memref<2x1x32xf32, #tpu.memory_space<vmem>>, vector<2x1x32xf32>
    %c0_8 = arith.constant 0 : index
    %c0_9 = arith.constant 0 : index
    %5 = vector.load %arg4[%c0_8, %c0_9] : memref<32x256xf32, #tpu.memory_space<vmem>>, vector<32x256xf32>
    %6 = vector.extract_strided_slice %5 {offsets = [0, 0], sizes = [32, 96], strides = [1, 1]} : vector<32x256xf32> to vector<32x96xf32>
    %7 = vector.extract_strided_slice %5 {offsets = [0, 96], sizes = [32, 32], strides = [1, 1]} : vector<32x256xf32> to vector<32x32xf32>
    %8 = vector.extract_strided_slice %5 {offsets = [0, 128], sizes = [32, 64], strides = [1, 1]} : vector<32x256xf32> to vector<32x64xf32>
    %9 = vector.extract_strided_slice %5 {offsets = [0, 192], sizes = [32, 32], strides = [1, 1]} : vector<32x256xf32> to vector<32x32xf32>
    %10 = vector.extract_strided_slice %5 {offsets = [0, 224], sizes = [32, 32], strides = [1, 1]} : vector<32x256xf32> to vector<32x32xf32>
    %c0_10 = arith.constant 0 : index
    %c0_11 = arith.constant 0 : index
    %11 = vector.load %arg6[%c0_10, %c0_11] : memref<9x64xf32, #tpu.memory_space<vmem>>, vector<9x64xf32>
    %12 = vector.extract_strided_slice %11 {offsets = [0, 0], sizes = [1, 32], strides = [1, 1]} : vector<9x64xf32> to vector<1x32xf32>
    %13 = vector.extract_strided_slice %11 {offsets = [1, 0], sizes = [1, 32], strides = [1, 1]} : vector<9x64xf32> to vector<1x32xf32>
    %14 = vector.extract_strided_slice %11 {offsets = [2, 0], sizes = [1, 32], strides = [1, 1]} : vector<9x64xf32> to vector<1x32xf32>
    %15 = vector.extract_strided_slice %11 {offsets = [3, 0], sizes = [1, 32], strides = [1, 1]} : vector<9x64xf32> to vector<1x32xf32>
    %16 = vector.extract_strided_slice %11 {offsets = [4, 0], sizes = [1, 32], strides = [1, 1]} : vector<9x64xf32> to vector<1x32xf32>
    %17 = vector.extract_strided_slice %11 {offsets = [5, 0], sizes = [1, 32], strides = [1, 1]} : vector<9x64xf32> to vector<1x32xf32>
    %18 = vector.extract_strided_slice %11 {offsets = [6, 0], sizes = [1, 32], strides = [1, 1]} : vector<9x64xf32> to vector<1x32xf32>
    %19 = vector.extract_strided_slice %11 {offsets = [7, 0], sizes = [1, 64], strides = [1, 1]} : vector<9x64xf32> to vector<1x64xf32>
    %20 = vector.extract_strided_slice %11 {offsets = [8, 0], sizes = [1, 64], strides = [1, 1]} : vector<9x64xf32> to vector<1x64xf32>
    %21 = tpu.concatenate %1, %3 in 0 : vector<16x32xf32>, vector<16x32xf32> -> vector<32x32xf32>
    %cst = arith.constant dense<0.000000e+00> : vector<32x96xf32>
    %22 = tpu.matmul %21, %6, %cst {dimension_numbers = #tpu.dot_dimension_numbers<[1], [0], [0], [1], [0, 0, 1, 1], [], []>} : vector<32x32xf32>, vector<32x96xf32>, vector<32x96xf32> -> vector<32x96xf32>
    %23 = vector.extract_strided_slice %22 {offsets = [0, 0], sizes = [16, 32], strides = [1, 1]} : vector<32x96xf32> to vector<16x32xf32>
    %24 = vector.broadcast %12 : vector<1x32xf32> to vector<16x32xf32>
    %25 = arith.addf %23, %24 : vector<16x32xf32>
    %26 = vector.extract_strided_slice %22 {offsets = [16, 32], sizes = [16, 64], strides = [1, 1]} : vector<32x96xf32> to vector<16x64xf32>
    %27 = vector.broadcast %19 : vector<1x64xf32> to vector<16x64xf32>
    %28 = arith.addf %26, %27 : vector<16x64xf32>
    %29 = vector.shape_cast %25 : vector<16x32xf32> to vector<2x8x32xf32>
    %30 = vector.extract_strided_slice %28 {offsets = [0, 0], sizes = [16, 32], strides = [1, 1]} : vector<16x64xf32> to vector<16x32xf32>
    %31 = vector.shape_cast %30 : vector<16x32xf32> to vector<2x8x32xf32>
    %32 = vector.extract_strided_slice %28 {offsets = [0, 32], sizes = [16, 32], strides = [1, 1]} : vector<16x64xf32> to vector<16x32xf32>
    %33 = vector.shape_cast %32 : vector<16x32xf32> to vector<2x8x32xf32>
    %34 = tpu.concatenate %31, %31, %31, %31 in 1 : vector<2x8x32xf32>, vector<2x8x32xf32>, vector<2x8x32xf32>, vector<2x8x32xf32> -> vector<2x32x32xf32>
    %35 = vector.shape_cast %9 : vector<32x32xf32> to vector<1x32x32xf32>
    %36 = vector.broadcast %35 : vector<1x32x32xf32> to vector<2x32x32xf32>
    %37 = arith.mulf %34, %36 : vector<2x32x32xf32>
    %38 = tpu.concatenate %33, %33, %33, %33 in 1 : vector<2x8x32xf32>, vector<2x8x32xf32>, vector<2x8x32xf32>, vector<2x8x32xf32> -> vector<2x32x32xf32>
    %39 = vector.shape_cast %9 : vector<32x32xf32> to vector<1x32x32xf32>
    %40 = vector.broadcast %39 : vector<1x32x32xf32> to vector<2x32x32xf32>
    %41 = arith.mulf %38, %40 : vector<2x32x32xf32>
    "tpu.trace_start"() <{level = 10 : i32, message = "bth,bch->btc"}> : () -> ()
    %cst_12 = arith.constant dense<0.000000e+00> : vector<2x8x32xf32>
    %42 = tpu.matmul %29, %37, %cst_12 {dimension_numbers = #tpu.dot_dimension_numbers<[2], [2], [1], [1], [0, 0, 0, 1, 1, 1], [0], [0]>} : vector<2x8x32xf32>, vector<2x32x32xf32>, vector<2x8x32xf32> -> vector<2x8x32xf32>
    "tpu.trace_stop"() : () -> ()
    %cst_13 = arith.constant 0.353553385 : f32
    %43 = vector.broadcast %cst_13 : f32 to vector<2x8x32xf32>
    %44 = arith.mulf %42, %43 : vector<2x8x32xf32>
    %45 = vector.broadcast %4 : vector<2x1x32xf32> to vector<2x8x32xf32>
    %46 = arith.addf %44, %45 : vector<2x8x32xf32>
    %cst_14 = arith.constant dense<0xFF800000> : vector<2x8xf32>
    %47 = vector.multi_reduction <maximumf>, %46, %cst_14 [2] : vector<2x8x32xf32> to vector<2x8xf32>
    %48 = vector.shape_cast %47 : vector<2x8xf32> to vector<2x8x1xf32>
    %49 = vector.broadcast %48 : vector<2x8x1xf32> to vector<2x8x32xf32>
    %50 = arith.subf %46, %49 : vector<2x8x32xf32>
    %51 = math.exp %50 : vector<2x8x32xf32>
    %52 = vector.shape_cast %51 : vector<2x8x32xf32> to vector<16x32xf32>
    %cst_15 = arith.constant dense<0.000000e+00> : vector<16x32xf32>
    %53 = tpu.matmul %52, %10, %cst_15 {dimension_numbers = #tpu.dot_dimension_numbers<[1], [0], [0], [1], [0, 0, 1, 1], [], []>} : vector<16x32xf32>, vector<32x32xf32>, vector<16x32xf32> -> vector<16x32xf32>
    %cst_16 = arith.constant 1.000000e-30 : f32
    %54 = vector.broadcast %cst_16 : f32 to vector<16x32xf32>
    %55 = arith.maximumf %53, %54 : vector<16x32xf32>
    %56 = tpu.reciprocal %55 {approx = true} : vector<16x32xf32> -> vector<16x32xf32>
    %57 = arith.mulf %52, %56 : vector<16x32xf32>
    %58 = vector.shape_cast %57 : vector<16x32xf32> to vector<2x8x32xf32>
    "tpu.trace_start"() <{level = 10 : i32, message = "btc,bch->bth"}> : () -> ()
    %cst_17 = arith.constant dense<0.000000e+00> : vector<2x8x32xf32>
    %59 = tpu.matmul %58, %41, %cst_17 {dimension_numbers = #tpu.dot_dimension_numbers<[2], [1], [1], [2], [0, 0, 0, 1, 1, 2], [0], [0]>} : vector<2x8x32xf32>, vector<2x32x32xf32>, vector<2x8x32xf32> -> vector<2x8x32xf32>
    "tpu.trace_stop"() : () -> ()
    %60 = vector.shape_cast %59 : vector<2x8x32xf32> to vector<16x32xf32>
    %cst_18 = arith.constant dense<0.000000e+00> : vector<16x32xf32>
    %61 = tpu.matmul %60, %7, %cst_18 {dimension_numbers = #tpu.dot_dimension_numbers<[1], [0], [0], [1], [0, 0, 1, 1], [], []>} : vector<16x32xf32>, vector<32x32xf32>, vector<16x32xf32> -> vector<16x32xf32>
    %62 = vector.broadcast %13 : vector<1x32xf32> to vector<16x32xf32>
    %63 = arith.addf %61, %62 : vector<16x32xf32>
    %64 = arith.addf %63, %1 : vector<16x32xf32>
    %cst_19 = arith.constant dense<0.000000e+00> : vector<16xf32>
    %65 = vector.multi_reduction <add>, %64, %cst_19 [1] : vector<16x32xf32> to vector<16xf32>
    %66 = vector.shape_cast %65 : vector<16xf32> to vector<16x1xf32>
    %cst_20 = arith.constant 3.200000e+01 : f32
    %67 = vector.broadcast %cst_20 : f32 to vector<16x1xf32>
    %68 = arith.divf %66, %67 : vector<16x1xf32>
    %69 = arith.mulf %64, %64 : vector<16x32xf32>
    %cst_21 = arith.constant dense<0.000000e+00> : vector<16xf32>
    %70 = vector.multi_reduction <add>, %69, %cst_21 [1] : vector<16x32xf32> to vector<16xf32>
    %71 = vector.shape_cast %70 : vector<16xf32> to vector<16x1xf32>
    %cst_22 = arith.constant 3.200000e+01 : f32
    %72 = vector.broadcast %cst_22 : f32 to vector<16x1xf32>
    %73 = arith.divf %71, %72 : vector<16x1xf32>
    %74 = arith.mulf %68, %68 : vector<16x1xf32>
    %75 = arith.subf %73, %74 : vector<16x1xf32>
    %76 = vector.broadcast %68 : vector<16x1xf32> to vector<16x32xf32>
    %77 = arith.subf %64, %76 : vector<16x32xf32>
    %cst_23 = arith.constant 9.99999996E-13 : f32
    %78 = vector.broadcast %cst_23 : f32 to vector<16x1xf32>
    %79 = arith.addf %75, %78 : vector<16x1xf32>
    %80 = math.rsqrt %79 : vector<16x1xf32>
    %81 = vector.broadcast %80 : vector<16x1xf32> to vector<16x32xf32>
    %82 = arith.mulf %77, %81 : vector<16x32xf32>
    %83 = vector.broadcast %14 : vector<1x32xf32> to vector<16x32xf32>
    %84 = arith.mulf %82, %83 : vector<16x32xf32>
    %85 = vector.broadcast %15 : vector<1x32xf32> to vector<16x32xf32>
    %86 = arith.addf %84, %85 : vector<16x32xf32>
    %cst_24 = arith.constant dense<0.000000e+00> : vector<16x64xf32>
    %87 = tpu.matmul %86, %8, %cst_24 {dimension_numbers = #tpu.dot_dimension_numbers<[1], [0], [0], [1], [0, 0, 1, 1], [], []>} : vector<16x32xf32>, vector<32x64xf32>, vector<16x64xf32> -> vector<16x64xf32>
    %88 = vector.broadcast %20 : vector<1x64xf32> to vector<16x64xf32>
    %89 = arith.addf %87, %88 : vector<16x64xf32>
    %cst_25 = arith.constant 5.000000e-01 : f32
    %90 = vector.broadcast %cst_25 : f32 to vector<16x64xf32>
    %91 = arith.mulf %90, %89 : vector<16x64xf32>
    %cst_26 = arith.constant 1.41421354 : f32
    %92 = vector.broadcast %cst_26 : f32 to vector<16x64xf32>
    %93 = arith.divf %89, %92 : vector<16x64xf32>
    %94 = math.erf %93 : vector<16x64xf32>
    %cst_27 = arith.constant 1.000000e+00 : f32
    %95 = vector.broadcast %cst_27 : f32 to vector<16x64xf32>
    %96 = arith.addf %95, %94 : vector<16x64xf32>
    %97 = arith.mulf %91, %96 : vector<16x64xf32>
    %c0_28 = arith.constant 0 : index
    %c0_29 = arith.constant 0 : index
    %98 = vector.load %arg5[%c0_28, %c0_29] : memref<64x32xf32, #tpu.memory_space<vmem>>, vector<64x32xf32>
    %cst_30 = arith.constant dense<0.000000e+00> : vector<16x32xf32>
    %99 = tpu.matmul %97, %98, %cst_30 {dimension_numbers = #tpu.dot_dimension_numbers<[1], [0], [0], [1], [0, 0, 1, 1], [], []>} : vector<16x64xf32>, vector<64x32xf32>, vector<16x32xf32> -> vector<16x32xf32>
    %100 = vector.broadcast %16 : vector<1x32xf32> to vector<16x32xf32>
    %101 = arith.addf %99, %100 : vector<16x32xf32>
    %102 = arith.addf %101, %86 : vector<16x32xf32>
    %cst_31 = arith.constant dense<0.000000e+00> : vector<16xf32>
    %103 = vector.multi_reduction <add>, %102, %cst_31 [1] : vector<16x32xf32> to vector<16xf32>
    %104 = vector.shape_cast %103 : vector<16xf32> to vector<16x1xf32>
    %cst_32 = arith.constant 3.200000e+01 : f32
    %105 = vector.broadcast %cst_32 : f32 to vector<16x1xf32>
    %106 = arith.divf %104, %105 : vector<16x1xf32>
    %107 = arith.mulf %102, %102 : vector<16x32xf32>
    %cst_33 = arith.constant dense<0.000000e+00> : vector<16xf32>
    %108 = vector.multi_reduction <add>, %107, %cst_33 [1] : vector<16x32xf32> to vector<16xf32>
    %109 = vector.shape_cast %108 : vector<16xf32> to vector<16x1xf32>
    %cst_34 = arith.constant 3.200000e+01 : f32
    %110 = vector.broadcast %cst_34 : f32 to vector<16x1xf32>
    %111 = arith.divf %109, %110 : vector<16x1xf32>
    %112 = arith.mulf %106, %106 : vector<16x1xf32>
    %113 = arith.subf %111, %112 : vector<16x1xf32>
    %114 = vector.broadcast %106 : vector<16x1xf32> to vector<16x32xf32>
    %115 = arith.subf %102, %114 : vector<16x32xf32>
    %cst_35 = arith.constant 9.99999996E-13 : f32
    %116 = vector.broadcast %cst_35 : f32 to vector<16x1xf32>
    %117 = arith.addf %113, %116 : vector<16x1xf32>
    %118 = math.rsqrt %117 : vector<16x1xf32>
    %119 = vector.broadcast %118 : vector<16x1xf32> to vector<16x32xf32>
    %120 = arith.mulf %115, %119 : vector<16x32xf32>
    %121 = vector.broadcast %17 : vector<1x32xf32> to vector<16x32xf32>
    %122 = arith.mulf %120, %121 : vector<16x32xf32>
    %123 = vector.broadcast %18 : vector<1x32xf32> to vector<16x32xf32>
    %124 = arith.addf %122, %123 : vector<16x32xf32>
    %125 = vector.shape_cast %124 : vector<16x32xf32> to vector<2x8x32xf32>
    %126 = tpu.concatenate %125, %58 in 2 : vector<2x8x32xf32>, vector<2x8x32xf32> -> vector<2x8x64xf32>
    %c0_36 = arith.constant 0 : index
    %c0_37 = arith.constant 0 : index
    %c0_38 = arith.constant 0 : index
    %127 = vector.load %arg7[%c0_36, %c0_37, %c0_38] : memref<2x8x64xf32, #tpu.memory_space<vmem>>, vector<2x8x64xf32>
    tpu.vector_store %arg7[%c0_36, %c0_37, %c0_38], %126 {strides = array<i32>} : memref<2x8x64xf32, #tpu.memory_space<vmem>>, vector<2x8x64xf32>,
    return
  }
  func.func @transform_0(%arg0: i32) -> (i32, i32, i32) {
    %c0_i32 = arith.constant 0 : i32
    %c0_i32_0 = arith.constant 0 : i32
    %c0_i32_1 = arith.constant 0 : i32
    %c0_i32_2 = arith.constant 0 : i32
    return %c0_i32, %c0_i32_0, %c0_i32_1 : i32, i32, i32
  }
  func.func @transform_1(%arg0: i32) -> (i32, i32, i32) {
    %c0_i32 = arith.constant 0 : i32
    %c0_i32_0 = arith.constant 0 : i32
    %c0_i32_1 = arith.constant 0 : i32
    %c0_i32_2 = arith.constant 0 : i32
    return %c0_i32, %c0_i32_0, %c0_i32_1 : i32, i32, i32
  }
  func.func @transform_2(%arg0: i32) -> (i32, i32, i32) {
    %c0_i32 = arith.constant 0 : i32
    %c0_i32_0 = arith.constant 0 : i32
    %c0_i32_1 = arith.constant 0 : i32
    %c0_i32_2 = arith.constant 0 : i32
    return %c0_i32, %c0_i32_0, %c0_i32_1 : i32, i32, i32
  }
  func.func @transform_3(%arg0: i32) -> (i32, i32) {
    %c0_i32 = arith.constant 0 : i32
    %c0_i32_0 = arith.constant 0 : i32
    %c0_i32_1 = arith.constant 0 : i32
    return %c0_i32, %c0_i32_0 : i32, i32
  }
  func.func @transform_4(%arg0: i32) -> (i32, i32) {
    %c0_i32 = arith.constant 0 : i32
    %c0_i32_0 = arith.constant 0 : i32
    %c0_i32_1 = arith.constant 0 : i32
    return %c0_i32, %c0_i32_0 : i32, i32
  }
  func.func @transform_5(%arg0: i32) -> (i32, i32) {
    %c0_i32 = arith.constant 0 : i32
    %c0_i32_0 = arith.constant 0 : i32
    %c0_i32_1 = arith.constant 0 : i32
    return %c0_i32, %c0_i32_0 : i32, i32
  }
  func.func @transform_6(%arg0: i32) -> (i32, i32, i32) {
    %c0_i32 = arith.constant 0 : i32
    %c0_i32_0 = arith.constant 0 : i32
    %c0_i32_1 = arith.constant 0 : i32
    %c0_i32_2 = arith.constant 0 : i32
    return %c0_i32, %c0_i32_0, %c0_i32_1 : i32, i32, i32
  }
}

</mosaic_0001>

<bundles_post_ra>
// kernel: span_attention_layer.1
= control target key start
LH: loop header
LB: loop body
LE: loop exit
PB: predicated region body
PF: predicated region fallthrough
CT: control target
= control target key end

     0   :  { %s801_s7 = smov 96   ;;  %vm39_vm0 = vcmask 261120   ;;  %s802_s14 = smov 32   ;;  %vm599_vm13 = vcmask 523264   ;;  %s1082_s3 = inlined_call_operand.vmem [shape: f32[32,256], index: 3, kind: input, shape index: {}]   ;;  %s1083_s5 = inlined_call_operand.vmem [shape: f32[9,64], index: 5, kind: input, shape index: {}]   ;;  %s1084_s1 = inlined_call_operand.vmem [shape: f32[2,8,32], index: 1, kind: input, shape index: {}]   ;;  %s1085_s0 = inlined_call_operand.vmem [shape: f32[2,8,32], index: 0, kind: input, shape index: {}]   ;;  %s1086_s2 = inlined_call_operand.vmem [shape: f32[2,1,32], index: 2, kind: input, shape index: {}]   ;;  %s1087_s4 = inlined_call_operand.vmem [shape: f32[64,32], index: 4, kind: input, shape index: {}]   ;;  %s1088_s6 = inlined_call_operand.vmem [shape: f32[2,8,64], index: 6, kind: output, shape index: {}]  }
   0x1   :  { %v844_v0 = vld [vmem:[%s1082_s3 + $0x30] sm:$0xff]  ;;  %v849_v1 = vld [vmem:[%s1082_s3 + $0x20] sm:$0xff]  ;;  %v866_v4 = vld [vmem:[%s1082_s3 + $0x28] sm:$0xff] }
   0x2   :  { %725 = vmatpush.msra.mxu2 %v844_v0  ;;  %64 = vmatpush.msra.mxu0 %v844_v0  ;;  %v856_v2 = vld [vmem:[%s1082_s3 + $0x10] sm:$0xff]  ;;  %v861_v3 = vld [vmem:[%s1083_s5] sm:$0xff]  ;;  %v875_v6 = vld [vmem:[%s1082_s3 + $0x8] sm:$0xff] }
   0x3   :  { %v84_v5 = vperm.slane %v861_v3, 7  ;;  %99 = vrot.lane.b32.xlu1 %v866_v4, %s801_s7  ;;  %v880_v7 = vld [vmem:[%s1082_s3] sm:$0xff]  ;;  %95 = vrot.lane.b32.xlu2 %v875_v6, %s801_s7  ;;  %v896_v9 = vld [vmem:[%s1082_s3 + $0x18] sm:$0xff]  ;;  %v81_v56 = vperm.slane %v861_v3, 0 }
   0x4   :  { %726 = vmatpush.msra.mxu2 %v849_v1  ;;  %65 = vmatpush.msra.mxu0 %v849_v1  ;;  %v25_v8 = vld [vmem:[%s1084_s1] sm:$0xff]  ;;  %v902_v10 = vld [vmem:[%s1082_s3 + $0x38] sm:$0xff]  ;;  %v26_v11 = vld [vmem:[%s1084_s1 + $0x8] sm:$0xff]  ;;  %v739_v32 = vpack.i.bf16 %v875_v6, %v896_v9 }
   0x5   :  { %86 = vrot.lane.b32.xlu0 %v84_v5, %s802_s14  ;;  %v915_v12 = vld [vmem:[%s1085_s0] sm:$0xff]  ;;  %v922_v13 = vld [vmem:[%s1085_s0 + $0x8] sm:$0xff]  ;;  %v734_v30 = vpack.i.bf16 %v866_v4, %v902_v10  ;;  %s803_s0 = smov 64  }
   0x6   :  { %727 = vmatpush.msra.mxu2 %v856_v2  ;;  %66 = vmatpush.msra.mxu0 %v856_v2 }
   0x8   :  { %728 = vmatpush.msra.mxu2 %v880_v7  ;;  %67 = vmatpush.msra.mxu0 %v880_v7 }
   0x9   :  { %701 = vmatmul.msk.f32.vlgmr.msra.gmra.mxu2 %vm39_vm0, %v25_v8  ;;  %699 = vmatmul.msk.f32.vlgmr.msra.gmra.mxu0 %vm39_vm0, %v915_v12 }
   0xb   :  { %97 = vrot.lane.b32.xlu1 %v896_v9, %s801_s7 }
   0xd   :  { %101 = vrot.lane.b32.xlu0 %v902_v10, %s801_s7 }
  0x11   :  { %702 = vmatmul.msk.f32.gmra.mxu2 %vm39_vm0, %v26_v11  ;;  %700 = vmatmul.msk.f32.gmra.mxu0 %vm39_vm0, %v922_v13 }
  0x5d   :  { %v96_v27 = vpop.permute.xlu2 %95 }
  0x75   :  { %v100_v15 = vpop.permute.xlu1 %99 }
  0x77   :  { %v87_v14 = vpop.permute.xlu0 %86 }
  0x7d   :  { %v98_v23 = vpop.permute.xlu1 %97 }
  0x7f   :  { %v102_v17 = vpop.permute.xlu0 %101 }
  0x86   :  { %v69_v52 = vpop.f32.mrf.mxu0 }
  0x87   :  { %v82_v60 = vadd.f32 %v81_v56, %v69_v52 }
  0x8c   :  { %v75_v16 = vpop.f32.mrf.mxu2 }
  0x8d   :  { %v89_v18 = vadd.f32 %v87_v14, %v75_v16 }
  0x8e   :  { %v72_v58 = vpop.f32.mrf.mxu0 }
  0x8f   :  { %v110_v19 = vmul.f32 %v102_v17, %v89_v18  ;;  %v109_v20 = vmul.f32 %v100_v15, %v89_v18  ;;  %v108_v28 = vmul.f32 %v98_v23, %v89_v18  ;;  %v107_v29 = vmul.f32 %v96_v27, %v89_v18 }
  0x90   :  { %v117_v33 = vmul.f32 %v89_v18, %v866_v4  ;;  %v118_v34 = vmul.f32 %v89_v18, %v902_v10  ;;  %v116_v37 = vmul.f32 %v89_v18, %v896_v9  ;;  %v115_v40 = vmul.f32 %v89_v18, %v875_v6 }
  0x91   :  { %133 = vrot.lane.b32.xlu2 %v110_v19, %s801_s7  ;;  %131 = vrot.lane.b32.xlu1 %v109_v20, %s801_s7  ;;  %v83_v63 = vadd.f32 %v81_v56, %v72_v58  ;;  %v774_v19 = vld [vmem:[%s1086_s2] ss:$0 sm:$0xff] }
  0x92   :  { %v744_v35 = vpack.i.bf16 %v117_v33, %v118_v34 }
  0x94   :  { %v78_v21 = vpop.f32.mrf.mxu2 }
  0x95   :  { %v90_v22 = vadd.f32 %v87_v14, %v78_v21 }
  0x97   :  { %v114_v24 = vmul.f32 %v102_v17, %v90_v22  ;;  %v113_v25 = vmul.f32 %v100_v15, %v90_v22  ;;  %v112_v26 = vmul.f32 %v98_v23, %v90_v22  ;;  %v111_v31 = vmul.f32 %v96_v27, %v90_v22 }
  0x98   :  { %v122_v36 = vmul.f32 %v90_v22, %v902_v10  ;;  %v121_v39 = vmul.f32 %v90_v22, %v866_v4  ;;  %v119_v42 = vmul.f32 %v90_v22, %v875_v6  ;;  %v120_v43 = vmul.f32 %v90_v22, %v896_v9 }
  0x99   :  { %176 = vrot.lane.b32.xlu0 %v114_v24, %s801_s7  ;;  %174 = vrot.lane.b32.xlu2 %v113_v25, %s801_s7 }
  0x9a   :  { %172 = vrot.lane.b32.xlu1 %v112_v26, %s801_s7  ;;  %v749_v38 = vpack.i.bf16 %v116_v37, %v122_v36  ;;  %v754_v41 = vpack.i.bf16 %v115_v40, %v121_v39  ;;  %v759_v44 = vpack.i.bf16 %v119_v42, %v120_v43  ;;  %v764_v37 = vpack.i.bf16 %v849_v1, %v844_v0 }
  0xa1   :  { %129 = vrot.lane.b32.xlu0 %v108_v28, %s801_s7  ;;  %127 = vrot.lane.b32.xlu2 %v107_v29, %s801_s7 }
  0xa9   :  { %735 = vrot.lane.b32.xlu2 %v734_v30, %s802_s14  ;;  %170 = vrot.lane.b32.xlu0 %v111_v31, %s801_s7 }
  0xb1   :  { %740 = vrot.lane.b32.xlu2 %v739_v32, %s802_s14 }
  0xb9   :  { %745 = vrot.lane.b32.xlu2 %v744_v35, %s803_s0 }
  0xc1   :  { %750 = vrot.lane.b32.xlu2 %v749_v38, %s803_s0  ;;  %v769_v38 = vpack.i.bf16 %v880_v7, %v856_v2 }
  0xc9   :  { %755 = vrot.lane.b32.xlu2 %v754_v41, %s803_s0 }
  0xd1   :  { %760 = vrot.lane.b32.xlu2 %v759_v44, %s803_s0 }
  0xd9   :  { %770 = vrot.lane.b32.xlu2 %v769_v38, %s802_s14 }
  0xeb   :  { %v134_v45 = vpop.permute.xlu2 %133 }
  0xec   :  { %703 = vmatpush.xpose.msk.msra.mxu1 %vm39_vm0, %v134_v45 }
  0xf3   :  { %v175_v46 = vpop.permute.xlu2 %174 }
  0xfb   :  { %v128_v47 = vpop.permute.xlu2 %127 }
 0x103   :  { %v132_v48 = vpop.permute.xlu1 %131  ;;  %v736_v49 = vpop.permute.xlu2 %735 }
 0x104   :  { %704 = vmatpush.xpose.msk.msra.mxu1 %vm39_vm0, %v132_v48  ;;  %v737_v25 = vunpack.i.l.bf16 %v736_v49  ;;  %v738_v26 = vunpack.i.h.bf16 %v736_v49 }
 0x106   :  { %261 = vmatpush.msra.mxu3 %v737_v25 }
 0x108   :  { %262 = vmatpush.msra.mxu3 %v738_v26 }
 0x10b   :  { %v177_v50 = vpop.permute.xlu0 %176  ;;  %v741_v51 = vpop.permute.xlu2 %740 }
 0x10c   :  { %708 = vmatpush.xpose.msk.msrb.mxu2 %vm39_vm0, %v177_v50  ;;  %v173_v53 = vpop.permute.xlu1 %172  ;;  %v742_v27 = vunpack.i.l.bf16 %v741_v51  ;;  %v743_v28 = vunpack.i.h.bf16 %v741_v51  ;;  %v356_v51 = vperm.slane %v861_v3, 1 }
 0x10e   :  { %263 = vmatpush.msra.mxu3 %v742_v27 }
 0x110   :  { %709 = vmatpush.xpose.msk.msrb.mxu2 %vm39_vm0, %v175_v46  ;;  %264 = vmatpush.msra.mxu3 %v743_v28 }
 0x113   :  { %v130_v54 = vpop.permute.xlu0 %129  ;;  %v746_v55 = vpop.permute.xlu2 %745 }
 0x114   :  { %705 = vmatpush.xpose.msk.msra.mxu1 %vm39_vm0, %v130_v54  ;;  %710 = vmatpush.xpose.msk.msrb.mxu2 %vm39_vm0, %v173_v53  ;;  %v747_v57 = vunpack.i.l.bf16 %v746_v55  ;;  %v748_v59 = vunpack.i.h.bf16 %v746_v55 }
 0x118   :  { %706 = vmatpush.xpose.msk.msra.mxu1 %vm39_vm0, %v128_v47 }
 0x11b   :  { %v751_v61 = vpop.permute.xlu2 %750  ;;  %v171_v62 = vpop.permute.xlu0 %170  ;;  %707 = vmatmul.msk.f32.vlgmr.msra.gmra.mxu1 %vm39_vm0, %v82_v60 }
 0x11c   :  { %309 = vmatpush.msrb.mxu1 %v747_v57  ;;  %v752_v5 = vunpack.i.l.bf16 %v751_v61  ;;  %711 = vmatpush.xpose.msk.msrb.mxu2 %vm39_vm0, %v171_v62  ;;  %v753_v8 = vunpack.i.h.bf16 %v751_v61 }
 0x11e   :  { %310 = vmatpush.msrb.mxu1 %v748_v59 }
 0x11f   :  { %712 = vmatmul.msk.f32.vlgmr.msrb.gmra.mxu2 %vm39_vm0, %v83_v63 }
 0x120   :  { %311 = vmatpush.msrb.mxu1 %v753_v8  ;;  %348 = vmatpush.msra.mxu2 %v752_v5 }
 0x123   :  { %v756_v11 = vpop.permute.xlu2 %755 }
 0x124   :  { %v757_v14 = vunpack.i.l.bf16 %v756_v11  ;;  %v758_v15 = vunpack.i.h.bf16 %v756_v11 }
 0x126   :  { %312 = vmatpush.msrb.mxu1 %v758_v15  ;;  %349 = vmatpush.msra.mxu2 %v757_v14 }
 0x128   :  { %484 = vmatpush.msra.mxu1 %v902_v10 }
 0x12a   :  { %485 = vmatpush.msra.mxu1 %v866_v4  ;;  %v775_v4 = vld [vmem:[%s1086_s2 + $0x1] ss:$0 sm:$0xff] }
 0x12b   :  { %v761_v16 = vpop.permute.xlu2 %760 }
 0x12c   :  { %486 = vmatpush.msra.mxu1 %v896_v9  ;;  %v762_v17 = vunpack.i.l.bf16 %v761_v16  ;;  %v763_v18 = vunpack.i.h.bf16 %v761_v16 }
 0x12e   :  { %487 = vmatpush.msra.mxu1 %v875_v6  ;;  %350 = vmatpush.msra.mxu2 %v762_v17 }
 0x130   :  { %351 = vmatpush.msra.mxu2 %v763_v18 }
 0x133   :  { %v771_v1 = vpop.permute.xlu2 %770 }
 0x134   :  { %v772_v47 = vunpack.i.l.bf16 %v771_v1  ;;  %v773_v48 = vunpack.i.h.bf16 %v771_v1 }
 0x198   :  { %v163_v20 = vpop.f32.mrf.mxu1 }
 0x199   :  { %v209_v21 = vmul.f32 0.35355338, %v163_v20 }
 0x19b   :  { %v217_v22 = vadd.f32 %v774_v19, %v209_v21 }
 0x19d   :  { %v219_v10 = vsel %vm39_vm0, %v217_v22, -inf }
 0x19e   :  { %220 = vmax.xlane.f32.xlu1 %v219_v10 }
 0x1a2   :  { %v206_v9 = vpop.f32.mrf.mxu2 }
 0x1a3   :  { %v210_v23 = vmul.f32 0.35355338, %v206_v9 }
 0x1a5   :  { %v218_v6 = vadd.f32 %v775_v4, %v210_v23 }
 0x1a7   :  { %v222_v24 = vsel %vm39_vm0, %v218_v6, -inf }
 0x1a8   :  { %223 = vmax.xlane.f32.xlu0 %v222_v24 }
 0x1b7   :  { %765 = vrot.lane.b32.xlu1 %v764_v37, %s802_s14 }
 0x211   :  { %v221_v29 = vpop.xlane.xlu1 %220 }
 0x212   :  { %v225_v30 = vsub.f32 %v217_v22, %v221_v29 }
 0x214   :  { %v227_v31 = vmul.f32 1.442695, %v225_v30 }
 0x216   :  { %777 = vpow2.f32 %v227_v31  ;;  %v459_v31 = vperm.slane %v861_v3, 2 }
 0x21b   :  { %v224_v32 = vpop.xlane.xlu0 %223 }
 0x21c   :  { %v226_v33 = vsub.f32 %v218_v6, %v224_v32  ;;  %v778_v34 = vpop.eup %777 }
 0x21d   :  { %713 = vmatmul.msk.f32.vlgmr.msra.gmra.mxu3 %vm39_vm0, %v778_v34 }
 0x21e   :  { %v229_v35 = vmul.f32 1.442695, %v226_v33 }
 0x220   :  { %779 = vpow2.f32 %v229_v35  ;;  %v462_v35 = vperm.slane %v861_v3, 3 }
 0x226   :  { %v780_v36 = vpop.eup %779 }
 0x227   :  { %714 = vmatmul.msk.f32.gmra.mxu3 %vm39_vm0, %v780_v36 }
 0x229   :  { %v766_v0 = vpop.permute.xlu1 %765 }
 0x22a   :  { %v767_v2 = vunpack.i.l.bf16 %v766_v0  ;;  %v768_v7 = vunpack.i.h.bf16 %v766_v0 }
 0x22c   :  { %391 = vmatpush.msrb.mxu3 %v767_v2 }
 0x22e   :  { %392 = vmatpush.msrb.mxu3 %v768_v7 }
 0x230   :  { %393 = vmatpush.msrb.mxu3 %v772_v47  ;;  %v805_v47 = vmov 1.4142135  }
 0x232   :  { %394 = vmatpush.msrb.mxu3 %v773_v48 }
 0x2a0   :  { %v266_v39 = vpop.f32.mrf.mxu3 }
 0x2a1   :  { %v272_v40 = vmax.f32 %v266_v39, 1e-30 }
 0x2a3   :  { %781 = vrcp.f32 %v272_v40 }
 0x2a9   :  { %v782_v41 = vpop.eup %781 }
 0x2aa   :  { %v269_v42 = vpop.f32.mrf.mxu3  ;;  %v276_v44 = vmul.f32 %v782_v41, %v778_v34 }
 0x2ab   :  { %v273_v43 = vmax.f32 %v269_v42, 1e-30 }
 0x2ac   :  { %715 = vmatmul.msk.f32.vlgmr.msrb.gmra.mxu1 %vm39_vm0, %v276_v44 }
 0x2ad   :  { %783 = vrcp.f32 %v273_v43 }
 0x2b3   :  { %v784_v45 = vpop.eup %783 }
 0x2b4   :  { %v980_v46 = vmul.f32 %v784_v45, %v780_v36 }
 0x2b6   :  { %716 = vmatmul.msk.f32.vlgmr.msra.gmra.mxu2 %vm39_vm0, %v980_v46 }
 0x329   :  { %v314_v49 = vpop.f32.mrf.mxu1 }
 0x32a   :  { %717 = vmatmul.msk.f32.vlgmr.msrb.gmra.mxu3 %vm39_vm0, %v314_v49 }
 0x339   :  { %v353_v50 = vpop.f32.mrf.mxu2 }
 0x33a   :  { %718 = vmatmul.msk.f32.gmra.mxu3 %vm39_vm0, %v353_v50 }
 0x3ad   :  { %v396_v52 = vpop.f32.mrf.mxu3 }
 0x3ae   :  { %v397_v53 = vadd.f32 %v396_v52, %v356_v51 }
 0x3b0   :  { %v402_v54 = vadd.f32 %v397_v53, %v915_v12  ;;  %v804_v12 = vmov 32.0   ;;  %v776_v53 = vld [vmem:[%s1083_s5 + $0x8] ss:$0 sm:$0xff] }
 0x3b1   :  { %785 = vrcp.f32 %v804_v12 }
 0x3b2   :  { %v404_v55 = vsel %vm39_vm0, %v402_v54, 0.0  ;;  %v419_v56 = vmul.f32 %v402_v54, %v402_v54 }
 0x3b3   :  { %405 = vadd.xlane.f32.xlu0 %v404_v55 }
 0x3b4   :  { %v421_v57 = vsel %vm39_vm0, %v419_v56, 0.0 }
 0x3b5   :  { %422 = vadd.xlane.f32.xlu2 %v421_v57 }
 0x3b7   :  { %v786_v5 = vpop.eup %785 }
 0x3b8   :  { %v411_v8 = vmul.f32 32.0, %v786_v5  ;;  %vm415_vm1 = vweird.f32 %v786_v5 }
 0x3ba   :  { %v412_v11 = vsub.f32 1.0, %v411_v8  ;;  %v595_v8 = vld [vmem:[%s1087_s4 + $0x28] sm:$0xff] }
 0x3bc   :  { %v413_v14 = vmul.f32 %v786_v5, %v412_v11 }
 0x3bd   :  { %v399_v58 = vpop.f32.mrf.mxu3 }
 0x3be   :  { %v400_v59 = vadd.f32 %v399_v58, %v356_v51  ;;  %v414_v15 = vadd.f32 %v786_v5, %v413_v14 }
 0x3c0   :  { %v403_v60 = vadd.f32 %v400_v59, %v922_v13  ;;  %v994_v16 = vsel %vm415_vm1, %v786_v5, %v414_v15  ;;  %v594_v15 = vld [vmem:[%s1087_s4 + $0x20] sm:$0xff] }
 0x3c2   :  { %v407_v61 = vsel %vm39_vm0, %v403_v60, 0.0  ;;  %v420_v62 = vmul.f32 %v403_v60, %v403_v60 }
 0x3c3   :  { %408 = vadd.xlane.f32.xlu0 %v407_v61 }
 0x3c4   :  { %v424_v63 = vsel %vm39_vm0, %v420_v62, 0.0 }
 0x3cb   :  { %425 = vadd.xlane.f32.xlu0 %v424_v63  ;;  %v596_v63 = vld [vmem:[%s1087_s4 + $0x30] sm:$0xff] }
 0x3cd   :  { %685 = vrot.lane.b32.xlu2 %v276_v44, %s802_s14 }
 0x426   :  { %v406_v13 = vpop.xlane.xlu0 %405 }
 0x427   :  { %v417_v17 = vmul.f32 %v994_v16, %v406_v13 }
 0x428   :  { %v423_v18 = vpop.xlane.xlu2 %422 }
 0x429   :  { %v429_v19 = vmul.f32 %v417_v17, %v417_v17  ;;  %v427_v20 = vmul.f32 %v423_v18, %v994_v16  ;;  %v433_v30 = vsub.f32 %v402_v54, %v417_v17  ;;  %v593_v18 = vld [vmem:[%s1087_s4 + $0x18] sm:$0xff] }
 0x42b   :  { %v431_v21 = vsub.f32 %v427_v20, %v429_v19  ;;  %v592_v20 = vld [vmem:[%s1087_s4 + $0x10] sm:$0xff] }
 0x42d   :  { %v435_v22 = vadd.f32 1e-12, %v431_v21 }
 0x42f   :  { %787 = vrsqrt.f32 %v435_v22  ;;  %vm443_vm3 = vweird.f32 %v435_v22 }
 0x435   :  { %v788_v10 = vpop.eup %787 }
 0x436   :  { %v409_v4 = vpop.xlane.xlu0 %408  ;;  %v438_v9 = vmul.f32 %v788_v10, %v435_v22  ;;  %vm444_vm2 = vweird.f32 %v788_v10 }
 0x437   :  { %v418_v24 = vmul.f32 %v994_v16, %v409_v4  ;;  %vm445_vm4 = vmor %vm443_vm3, %vm444_vm2 }
 0x438   :  { %v439_v23 = vmul.f32 %v788_v10, %v438_v9 }
 0x439   :  { %v430_v28 = vmul.f32 %v418_v24, %v418_v24  ;;  %v434_v45 = vsub.f32 %v403_v60, %v418_v24  ;;  %v597_v60 = vld [vmem:[%s1087_s4 + $0x38] sm:$0xff] }
 0x43a   :  { %v440_v6 = vmul.f32 0.5, %v439_v23  ;;  %614 = vmatpush.msrb.mxu0 %v597_v60  ;;  %v590_v23 = vld [vmem:[%s1087_s4] sm:$0xff] }
 0x43c   :  { %v441_v25 = vsub.f32 1.5, %v440_v6  ;;  %615 = vmatpush.msrb.mxu0 %v596_v63 }
 0x43e   :  { %v426_v26 = vpop.xlane.xlu0 %425  ;;  %v442_v27 = vmul.f32 %v788_v10, %v441_v25  ;;  %616 = vmatpush.msrb.mxu0 %v595_v8 }
 0x43f   :  { %v428_v29 = vmul.f32 %v426_v26, %v994_v16 }
 0x440   :  { %v446_v32 = vsel %vm445_vm4, %v788_v10, %v442_v27  ;;  %617 = vmatpush.msrb.mxu0 %v594_v15  ;;  %v591_v10 = vld [vmem:[%s1087_s4 + $0x8] sm:$0xff] }
 0x441   :  { %v432_v33 = vsub.f32 %v428_v29, %v430_v28  ;;  %v457_v34 = vmul.f32 %v446_v32, %v433_v30 }
 0x442   :  { %618 = vmatpush.msrb.mxu0 %v593_v18 }
 0x443   :  { %v436_v36 = vadd.f32 1e-12, %v432_v33  ;;  %v460_v37 = vmul.f32 %v459_v31, %v457_v34 }
 0x444   :  { %619 = vmatpush.msrb.mxu0 %v592_v20 }
 0x445   :  { %789 = vrsqrt.f32 %v436_v36  ;;  %v1002_v38 = vadd.f32 %v462_v35, %v460_v37  ;;  %vm453_vm6 = vweird.f32 %v436_v36 }
 0x446   :  { %791 = vrcp.f32 %v805_v47  ;;  %620 = vmatpush.msrb.mxu0 %v591_v10 }
 0x447   :  { %719 = vmatmul.msk.f32.vlgmr.msra.gmra.mxu1 %vm39_vm0, %v1002_v38 }
 0x448   :  { %621 = vmatpush.msrb.mxu0 %v590_v23 }
 0x44b   :  { %v790_v39 = vpop.eup %789 }
 0x44c   :  { %v448_v40 = vmul.f32 %v790_v39, %v436_v36  ;;  %vm454_vm5 = vweird.f32 %v790_v39  ;;  %v792_v48 = vpop.eup %791 }
 0x44d   :  { %vm455_vm7 = vmor %vm453_vm6, %vm454_vm5  ;;  %v498_v49 = vmul.f32 1.4142135, %v792_v48  ;;  %vm502_vm8 = vweird.f32 %v792_v48 }
 0x44e   :  { %v449_v41 = vmul.f32 %v790_v39, %v448_v40 }
 0x44f   :  { %v499_v50 = vsub.f32 1.0, %v498_v49 }
 0x450   :  { %v450_v42 = vmul.f32 0.5, %v449_v41 }
 0x451   :  { %v500_v51 = vmul.f32 %v792_v48, %v499_v50 }
 0x452   :  { %v451_v43 = vsub.f32 1.5, %v450_v42 }
 0x453   :  { %v501_v52 = vadd.f32 %v792_v48, %v500_v51 }
 0x454   :  { %v452_v44 = vmul.f32 %v790_v39, %v451_v43 }
 0x455   :  { %v503_v55 = vsel %vm502_vm8, %v792_v48, %v501_v52 }
 0x456   :  { %v456_v0 = vsel %vm455_vm7, %v790_v39, %v452_v44 }
 0x457   :  { %v458_v1 = vmul.f32 %v456_v0, %v434_v45 }
 0x459   :  { %v461_v2 = vmul.f32 %v459_v31, %v458_v1 }
 0x45b   :  { %v1006_v7 = vadd.f32 %v462_v35, %v461_v2 }
 0x45d   :  { %720 = vmatmul.msk.f32.gmra.mxu1 %vm39_vm0, %v1006_v7 }
 0x4c4   :  { %v489_v54 = vpop.f32.mrf.mxu1 }
 0x4c5   :  { %v1013_v56 = vadd.f32 %v776_v53, %v489_v54 }
 0x4c7   :  { %v1016_v57 = vmul.f32 %v503_v55, %v1013_v56  ;;  %v495_v8 = vmul.f32 0.5, %v1013_v56 }
 0x4c9   :  { %v506_v58 = vmul.f32 %v1016_v57, %v1016_v57 }
 0x4cb   :  { %v507_v59 = vmin.f32 %v506_v58, 16.0 }
 0x4cd   :  { %v508_v61 = vmul.f32 2.1237322e-06, %v507_v59  ;;  %v519_v62 = vmul.f32 3.8918573e-05, %v507_v59 }
 0x4cf   :  { %v509_v12 = vadd.f32 0.00028619796, %v508_v61  ;;  %v520_v5 = vadd.f32 0.001143296, %v519_v62 }
 0x4d1   :  { %v510_v11 = vmul.f32 %v509_v12, %v507_v59  ;;  %v521_v14 = vmul.f32 %v520_v5, %v507_v59 }
 0x4d3   :  { %v511_v13 = vadd.f32 0.0036580483, %v510_v11  ;;  %v522_v17 = vadd.f32 0.014752088, %v521_v14 }
 0x4d5   :  { %v523_v19 = vmul.f32 %v522_v17, %v507_v59  ;;  %v512_v21 = vmul.f32 %v511_v13, %v507_v59 }
 0x4d7   :  { %v524_v22 = vadd.f32 0.112945676, %v523_v19  ;;  %v513_v24 = vadd.f32 0.05243302, %v512_v21 }
 0x4d9   :  { %v525_v4 = vmul.f32 %v524_v22, %v507_v59  ;;  %v514_v29 = vmul.f32 %v513_v24, %v507_v59 }
 0x4da   :  { %v492_v9 = vpop.f32.mrf.mxu1 }
 0x4db   :  { %v1044_v6 = vadd.f32 %v776_v53, %v492_v9  ;;  %v526_v25 = vadd.f32 0.4994258, %v525_v4  ;;  %v515_v34 = vadd.f32 0.18741608, %v514_v29 }
 0x4dd   :  { %v1047_v26 = vmul.f32 %v503_v55, %v1044_v6  ;;  %v527_v27 = vmul.f32 %v526_v25, %v507_v59  ;;  %v516_v41 = vmul.f32 %v515_v34, %v507_v59 }
 0x4df   :  { %v546_v28 = vmul.f32 %v1047_v26, %v1047_v26  ;;  %v528_v30 = vadd.f32 1.0, %v527_v27  ;;  %v517_v1 = vadd.f32 1.1283791, %v516_v41  ;;  %v496_v27 = vmul.f32 0.5, %v1044_v6 }
 0x4e1   :  { %v547_v31 = vmin.f32 %v546_v28, 16.0  ;;  %793 = vrcp.f32 %v528_v30  ;;  %v540_v2 = vand.u32 2147483648, %v528_v30  ;;  %v538_v48 = vand.u32 2147483647, %v528_v30 }
 0x4e2   :  { %vm534_vm10 = vweird.f32 %v528_v30  ;;  %v518_v54 = vmul.f32 %v517_v1, %v1016_v57 }
 0x4e3   :  { %v548_v32 = vmul.f32 2.1237322e-06, %v547_v31  ;;  %v559_v33 = vmul.f32 3.8918573e-05, %v547_v31  ;;  %v541_v53 = vor.u32 1.1754944e-38, %v540_v2  ;;  %vm539_vm12 = vcmp.eq.f32.partialorder %v538_v48, 8.507059e+37 }
 0x4e5   :  { %v549_v35 = vadd.f32 0.00028619796, %v548_v32  ;;  %v560_v36 = vadd.f32 0.001143296, %v559_v33 }
 0x4e7   :  { %v550_v37 = vmul.f32 %v549_v35, %v547_v31  ;;  %v561_v39 = vmul.f32 %v560_v36, %v547_v31  ;;  %v794_v40 = vpop.eup %793 }
 0x4e8   :  { %v530_v42 = vmul.f32 %v794_v40, %v528_v30  ;;  %vm535_vm9 = vweird.f32 %v794_v40  ;;  %v598_v30 = vperm.slane %v861_v3, 4 }
 0x4e9   :  { %v562_v43 = vadd.f32 0.014752088, %v561_v39  ;;  %v551_v44 = vadd.f32 0.0036580483, %v550_v37  ;;  %vm536_vm11 = vmor %vm534_vm10, %vm535_vm9 }
 0x4ea   :  { %v531_v45 = vsub.f32 1.0, %v530_v42 }
 0x4eb   :  { %v563_v0 = vmul.f32 %v562_v43, %v547_v31  ;;  %v552_v50 = vmul.f32 %v551_v44, %v547_v31 }
 0x4ec   :  { %v532_v47 = vmul.f32 %v794_v40, %v531_v45 }
 0x4ed   :  { %v564_v49 = vadd.f32 0.112945676, %v563_v0  ;;  %v553_v60 = vadd.f32 0.05243302, %v552_v50 }
 0x4ee   :  { %v533_v51 = vadd.f32 %v794_v40, %v532_v47 }
 0x4ef   :  { %v565_v52 = vmul.f32 %v564_v49, %v547_v31  ;;  %v554_v5 = vmul.f32 %v553_v60, %v547_v31 }
 0x4f0   :  { %v537_v55 = vsel %vm536_vm11, %v794_v40, %v533_v51 }
 0x4f1   :  { %v566_v58 = vadd.f32 0.4994258, %v565_v52  ;;  %v542_v59 = vsel %vm539_vm12, %v541_v53, %v537_v55  ;;  %v555_v15 = vadd.f32 0.18741608, %v554_v5  ;;  %v679_v52 = vperm.slane %v861_v3, 5 }
 0x4f2   :  { %v543_v61 = vmul.f32 %v542_v59, %v518_v54 }
 0x4f3   :  { %v567_v62 = vmul.f32 %v566_v58, %v547_v31  ;;  %v556_v13 = vmul.f32 %v555_v15, %v547_v31  ;;  %v682_v58 = vperm.slane %v861_v3, 6 }
 0x4f4   :  { %v721_v63 = vclamps-f32 %v543_v61, 1.0 }
 0x4f5   :  { %v568_v12 = vadd.f32 1.0, %v567_v62  ;;  %v557_v20 = vadd.f32 1.1283791, %v556_v13 }
 0x4f6   :  { %v586_v11 = vadd.f32 1.0, %v721_v63 }
 0x4f7   :  { %795 = vrcp.f32 %v568_v12  ;;  %v580_v19 = vand.u32 2147483648, %v568_v12  ;;  %v578_v22 = vand.u32 2147483647, %v568_v12  ;;  %vm574_vm15 = vweird.f32 %v568_v12 }
 0x4f8   :  { %v588_v14 = vmul.f32 %v586_v11, %v495_v8  ;;  %v558_v4 = vmul.f32 %v557_v20, %v1047_v26 }
 0x4f9   :  { %v581_v56 = vor.u32 1.1754944e-38, %v580_v19  ;;  %vm579_vm2 = vcmp.eq.f32.partialorder %v578_v22, 8.507059e+37 }
 0x4fa   :  { %723 = vmatmul.msk.f32.vlgmr.msrb.gmra.mxu0 %vm599_vm13, %v588_v14 }
 0x4fd   :  { %v796_v57 = vpop.eup %795 }
 0x4fe   :  { %v570_v17 = vmul.f32 %v796_v57, %v568_v12  ;;  %vm575_vm14 = vweird.f32 %v796_v57  ;;  %v686_v12 = vpop.permute.xlu2 %685 }
 0x4ff   :  { %vm576_vm1 = vmor %vm574_vm15, %vm575_vm14 }
 0x500   :  { %v571_v18 = vsub.f32 1.0, %v570_v17 }
 0x502   :  { %v572_v21 = vmul.f32 %v796_v57, %v571_v18 }
 0x504   :  { %v573_v10 = vadd.f32 %v796_v57, %v572_v21 }
 0x506   :  { %v577_v9 = vsel %vm576_vm1, %v796_v57, %v573_v10 }
 0x507   :  { %v582_v23 = vsel %vm579_vm2, %v581_v56, %v577_v9 }
 0x508   :  { %v583_v24 = vmul.f32 %v582_v23, %v558_v4 }
 0x50a   :  { %v722_v25 = vclamps-f32 %v583_v24, 1.0 }
 0x50c   :  { %v587_v28 = vadd.f32 1.0, %v722_v25 }
 0x50e   :  { %v589_v29 = vmul.f32 %v587_v28, %v496_v27 }
 0x510   :  { %724 = vmatmul.msk.f32.gmra.mxu0 %vm599_vm13, %v589_v29 }
 0x577   :  { %v623_v31 = vpop.f32.mrf.mxu0 }
 0x578   :  { %v624_v32 = vadd.f32 %v623_v31, %v598_v30 }
 0x57a   :  { %v629_v33 = vadd.f32 %v624_v32, %v1002_v38 }
 0x57c   :  { %v631_v34 = vsel %vm39_vm0, %v629_v33, 0.0  ;;  %v639_v26 = vmul.f32 %v629_v33, %v629_v33 }
 0x57d   :  { %632 = vadd.xlane.f32.xlu1 %v631_v34 }
 0x57e   :  { %v641_v35 = vsel %vm39_vm0, %v639_v26, 0.0 }
 0x57f   :  { %642 = vadd.xlane.f32.xlu0 %v641_v35 }
 0x58d   :  { %v626_v36 = vpop.f32.mrf.mxu0 }
 0x58e   :  { %v627_v37 = vadd.f32 %v626_v36, %v598_v30 }
 0x590   :  { %v630_v6 = vadd.f32 %v627_v37, %v1006_v7 }
 0x592   :  { %v634_v39 = vsel %vm39_vm0, %v630_v6, 0.0  ;;  %v640_v40 = vmul.f32 %v630_v6, %v630_v6 }
 0x593   :  { %635 = vadd.xlane.f32.xlu0 %v634_v39 }
 0x594   :  { %v644_v41 = vsel %vm39_vm0, %v640_v40, 0.0 }
 0x59b   :  { %645 = vadd.xlane.f32.xlu0 %v644_v41 }
 0x5af   :  { %687 = vrot.lane.b32.xlu0 %v980_v46, %s802_s14 }
 0x5f0   :  { %v633_v38 = vpop.xlane.xlu1 %632 }
 0x5f1   :  { %v637_v42 = vmul.f32 %v633_v38, %v994_v16 }
 0x5f2   :  { %v643_v43 = vpop.xlane.xlu0 %642 }
 0x5f3   :  { %v649_v44 = vmul.f32 %v637_v42, %v637_v42  ;;  %v647_v45 = vmul.f32 %v643_v43, %v994_v16  ;;  %v653_v46 = vsub.f32 %v629_v33, %v637_v42 }
 0x5f5   :  { %v651_v0 = vsub.f32 %v647_v45, %v649_v44 }
 0x5f7   :  { %v655_v1 = vadd.f32 1e-12, %v651_v0 }
 0x5f9   :  { %797 = vrsqrt.f32 %v655_v1  ;;  %vm663_vm4 = vweird.f32 %v655_v1 }
 0x5ff   :  { %v798_v7 = vpop.eup %797 }
 0x600   :  { %v658_v2 = vmul.f32 %v798_v7, %v655_v1  ;;  %vm664_vm3 = vweird.f32 %v798_v7 }
 0x601   :  { %vm665_vm5 = vmor %vm663_vm4, %vm664_vm3 }
 0x602   :  { %v659_v47 = vmul.f32 %v798_v7, %v658_v2 }
 0x604   :  { %v660_v48 = vmul.f32 0.5, %v659_v47 }
 0x606   :  { %v636_v49 = vpop.xlane.xlu0 %635  ;;  %v661_v50 = vsub.f32 1.5, %v660_v48 }
 0x607   :  { %v638_v54 = vmul.f32 %v636_v49, %v994_v16 }
 0x608   :  { %v662_v51 = vmul.f32 %v798_v7, %v661_v50 }
 0x609   :  { %v650_v61 = vmul.f32 %v638_v54, %v638_v54 }
 0x60a   :  { %v666_v53 = vsel %vm665_vm5, %v798_v7, %v662_v51 }
 0x60b   :  { %v677_v55 = vmul.f32 %v666_v53, %v653_v46 }
 0x60d   :  { %v680_v60 = vmul.f32 %v679_v52, %v677_v55 }
 0x60e   :  { %v646_v59 = vpop.xlane.xlu0 %645 }
 0x60f   :  { %v648_v62 = vmul.f32 %v646_v59, %v994_v16  ;;  %v683_v63 = vadd.f32 %v682_v58, %v680_v60  ;;  %v654_v16 = vsub.f32 %v630_v6, %v638_v54 }
 0x611   :  { %v652_v5 = vsub.f32 %v648_v62, %v650_v61  ;;  %v691_v8 = vsel %vm39_vm0, %v683_v63, %v686_v12 }
 0x612   :  { %693 = vst.msk [vmem:[%s1088_s6] sm:$0xff] %vm599_vm13, %v691_v8 }
 0x613   :  { %v656_v11 = vadd.f32 1e-12, %v652_v5 }
 0x615   :  { %799 = vrsqrt.f32 %v656_v11  ;;  %vm673_vm7 = vweird.f32 %v656_v11 }
 0x61b   :  { %v800_v14 = vpop.eup %799 }
 0x61c   :  { %v668_v15 = vmul.f32 %v800_v14, %v656_v11  ;;  %vm674_vm6 = vweird.f32 %v800_v14 }
 0x61d   :  { %vm675_vm8 = vmor %vm673_vm7, %vm674_vm6 }
 0x61e   :  { %v669_v3 = vmul.f32 %v800_v14, %v668_v15 }
 0x620   :  { %v670_v57 = vmul.f32 0.5, %v669_v3 }
 0x621   :  { %v688_v22 = vpop.permute.xlu0 %687 }
 0x622   :  { %v671_v13 = vsub.f32 1.5, %v670_v57 }
 0x624   :  { %v672_v17 = vmul.f32 %v800_v14, %v671_v13 }
 0x626   :  { %v676_v18 = vsel %vm675_vm8, %v800_v14, %v672_v17 }
 0x627   :  { %v678_v19 = vmul.f32 %v676_v18, %v654_v16 }
 0x629   :  { %v681_v20 = vmul.f32 %v679_v52, %v678_v19 }
 0x62b   :  { %v684_v21 = vadd.f32 %v682_v58, %v681_v20 }
 0x62d   :  { %v692_v10 = vsel %vm39_vm0, %v684_v21, %v688_v22 }
 0x62e   :  { %694 = vst.msk [vmem:[%s1088_s6 + $0x8] sm:$0xff] %vm599_vm13, %v692_v10 }

</bundles_post_ra>
